<compile_context>
chip_gen: v7x
topology: tpu7x:2x2x1
jax: 0.10.0
libtpu: 0.0.40
codegen_flags: <defaults>
</compile_context>

<pallas_src>
import math
import functools

import jax
import jax.numpy as jnp
from jax.experimental import pallas as pl
from jax.experimental.pallas import tpu as pltpu


def _round_up(x, m):
    return ((x + m - 1) // m) * m


def _fused_forward_kernel(pv_ref, pt_ref, po_ref, pr_ref,      # past idx (BB, L) i32
                          nv_ref, nt_ref, no_ref,              # next idx (BB, 1) i32
                          ptab_wk_ref, bk_ref,                 # (Kp, 4H) bf16, (1, 4H) f32
                          ntab_wq_ref, bq_ref,                 # (Knp, 4H) bf16, (1, 4H) f32
                          wo_past_ref, wo_next_ref, bo_ref,    # (Kp, Rp), (Knp, Rp) bf16, (1, Rp) f32
                          out_ref,
                          *, bb, seq_len, kp, knp, n_venues, n_teams, h4):
    L = seq_len
    off_t = n_venues
    off_o = n_venues + n_teams
    off_r = n_venues + 2 * n_teams

    # ---- multi-hot gather matrices, built on the VPU (vocab is tiny) --------
    iota_p = jax.lax.broadcasted_iota(jnp.int32, (bb, L, kp), 2)
    oh_past = ((iota_p == pv_ref[...][:, :, None]) |
               (iota_p == pt_ref[...][:, :, None] + off_t) |
               (iota_p == po_ref[...][:, :, None] + off_o) |
               (iota_p == pr_ref[...][:, :, None] + off_r))          # (BB, L, Kp) bool

    iota_n = jax.lax.broadcasted_iota(jnp.int32, (bb, knp), 1)
    oh_next = ((iota_n == nv_ref[...]) |
               (iota_n == nt_ref[...] + off_t) |
               (iota_n == no_ref[...] + off_o)).astype(jnp.bfloat16)  # (BB, Knp)

    # ---- gather + k/q projections folded into one MXU matmul each -----------
    oh_past_b = oh_past.astype(jnp.bfloat16)
    k = jnp.dot(oh_past_b.reshape(bb * L, kp), ptab_wk_ref[...],
                preferred_element_type=jnp.float32) + bk_ref[...]     # (BB*L, 4H) f32
    q = jnp.dot(oh_next, ntab_wq_ref[...],
                preferred_element_type=jnp.float32) + bq_ref[...]     # (BB, 4H) f32 (pre-scaled)

    # ---- lane-dense scores + softmax over L in f32 ---------------------------
    k3 = k.reshape(bb, L, h4)
    scores = jnp.sum(k3 * q[:, None, :], axis=-1)                     # (BB, L)
    m = jnp.max(scores, axis=-1, keepdims=True)
    e = jnp.exp(scores - m)
    attn = e * pl.reciprocal(jnp.sum(e, axis=-1, keepdims=True), approx=True)  # (BB, L)

    # ---- attention-weighted sum over the Kp-wide one-hot (not 4H-wide seq) ---
    w_oh = jnp.sum(jnp.where(oh_past, attn[:, :, None], 0.0), axis=1)  # (BB, Kp) f32

    # ---- fused out_proj: past_repr @ wo_p + next_cond @ wo_n + bo ------------
    out_ref[...] = (
        jnp.dot(w_oh.astype(jnp.bfloat16), wo_past_ref[...],
                preferred_element_type=jnp.float32)
        + jnp.dot(oh_next, wo_next_ref[...], preferred_element_type=jnp.float32)
        + bo_ref[...])                                                 # (BB, Rp) lane-dense


def prepare_params(params, hidden_size):
    """One-time parameter prep (hoisted out of the per-call forward path)."""
    H = hidden_size
    ve, te, re = params['venue_embed'], params['team_embed'], params['result_embed']
    NV, NT, NR = ve.shape[0], te.shape[0], re.shape[0]
    H4, H3 = 4 * H, 3 * H
    R = params['bo'].shape[-1]

    Kp = _round_up(NV + 2 * NT + NR, 16)      # past one-hot width (bf16 sublane pack)
    Knp = _round_up(NV + 2 * NT, 16)          # next one-hot width
    Rp = _round_up(R, 128)                    # lane-dense output width

    # Block-diagonal embedding tables (row r of T selects the right slice of the
    # concatenated feature vector).
    T_past = jnp.zeros((Kp, H4), jnp.float32)
    T_past = T_past.at[0:NV, 0:H].set(ve)
    T_past = T_past.at[NV:NV + NT, H:2 * H].set(te)
    T_past = T_past.at[NV + NT:NV + 2 * NT, 2 * H:3 * H].set(te)
    T_past = T_past.at[NV + 2 * NT:NV + 2 * NT + NR, 3 * H:4 * H].set(re)

    T_next = jnp.zeros((Knp, H3), jnp.float32)
    T_next = T_next.at[0:NV, 0:H].set(ve)
    T_next = T_next.at[NV:NV + NT, H:2 * H].set(te)
    T_next = T_next.at[NV + NT:NV + 2 * NT, 2 * H:3 * H].set(te)

    scale = 1.0 / math.sqrt(3.0 * H)

    ptab_wk = (T_past @ params['wk']).astype(jnp.bfloat16)              # (Kp, 4H)
    ntab_wq = (T_next @ (params['wq'] * scale)).astype(jnp.bfloat16)    # (Knp, 4H)

    wo = params['wo']                                                    # (7H, R)
    wo_past = jnp.zeros((Kp, Rp), jnp.float32).at[:, :R].set(T_past @ wo[:H4]).astype(jnp.bfloat16)
    wo_next = jnp.zeros((Knp, Rp), jnp.float32).at[:, :R].set(T_next @ wo[H4:]).astype(jnp.bfloat16)

    bk = params['bk'].reshape(1, H4).astype(jnp.float32)
    bq = (params['bq'] * scale).reshape(1, H4).astype(jnp.float32)
    bo = jnp.zeros((1, Rp), jnp.float32).at[:, :R].set(params['bo'].reshape(1, R))

    return dict(ptab_wk=ptab_wk, bk=bk, ntab_wq=ntab_wq, bq=bq,
                wo_past=wo_past, wo_next=wo_next, bo=bo,
                meta=dict(H=H, NV=NV, NT=NT, NR=NR, Kp=Kp, Knp=Knp,
                          R=R, Rp=Rp, H4=H4))


def model_forward(prepared, inputs, *, batch_block=64):
    meta = prepared['meta']
    pm = inputs['past_matches']
    nmc = inputs['next_match_conditions']
    B, L = pm['venue'].shape

    # Batch tiling: >= 2 grid steps when B allows (v7x: 2 TensorCores),
    # sublane-aligned BB so every BlockSpec is legal.
    BB = min(batch_block, B)
    if BB == B and B > 8:
        BB = (B + 1) // 2
    BB = max(8, _round_up(BB, 8))
    Bp = _round_up(B, BB)
    grid = Bp // BB

    def pad_idx(x):
        x = x.astype(jnp.int32)
        if x.shape[0] == Bp:
            return x
        return jnp.zeros((Bp,) + x.shape[1:], jnp.int32).at[:B].set(x)

    pv, pt, po, pr = (pad_idx(pm[k]) for k in ('venue', 'team', 'opponent', 'result'))
    nvx, ntx, nox = (pad_idx(nmc[k]) for k in ('venue', 'team', 'opponent'))

    kernel = functools.partial(
        _fused_forward_kernel, bb=BB, seq_len=L,
        kp=meta['Kp'], knp=meta['Knp'],
        n_venues=meta['NV'], n_teams=meta['NT'], h4=meta['H4'])

    past_idx_spec = pl.BlockSpec((BB, L), lambda b: (b, 0))
    next_idx_spec = pl.BlockSpec((BB, 1), lambda b: (b, 0))
    const = lambda shape: pl.BlockSpec(shape, lambda b: (0, 0))   # resident weights

    out = pl.pallas_call(
        kernel,
        out_shape=jax.ShapeDtypeStruct((Bp, meta['Rp']), jnp.float32),
        grid=(grid,),
        in_specs=[past_idx_spec, past_idx_spec, past_idx_spec, past_idx_spec,
                  next_idx_spec, next_idx_spec, next_idx_spec,
                  const(prepared['ptab_wk'].shape), const(prepared['bk'].shape),
                  const(prepared['ntab_wq'].shape), const(prepared['bq'].shape),
                  const(prepared['wo_past'].shape), const(prepared['wo_next'].shape),
                  const(prepared['bo'].shape)],
        out_specs=pl.BlockSpec((BB, meta['Rp']), lambda b: (b, 0)),
        compiler_params=pltpu.CompilerParams(
            dimension_semantics=("parallel",),
            vmem_limit_bytes=32 * 1024 * 1024),
    )(pv, pt, po, pr, nvx, ntx, nox,
      prepared['ptab_wk'], prepared['bk'],
      prepared['ntab_wq'], prepared['bq'],
      prepared['wo_past'], prepared['wo_next'], prepared['bo'])

    return out[:B, :meta['R']]                                    # (B, R) logits


def _reference_forward(params, inputs, hidden_size):
    """Pure-JAX f32 reference mirroring the PyTorch forward semantics."""
    H = hidden_size
    pm = inputs['past_matches']
    nmc = inputs['next_match_conditions']
    past_seq = jnp.concatenate([
        jnp.take(params['venue_embed'], pm['venue'], axis=0),
        jnp.take(params['team_embed'], pm['team'], axis=0),
        jnp.take(params['team_embed'], pm['opponent'], axis=0),
        jnp.take(params['result_embed'], pm['result'], axis=0)], axis=-1)
    next_cond = jnp.concatenate([
        jnp.take(params['venue_embed'], nmc['venue'], axis=0),
        jnp.take(params['team_embed'], nmc['team'], axis=0),
        jnp.take(params['team_embed'], nmc['opponent'], axis=0)], axis=-1)
    k = past_seq @ params['wk'] + params['bk']                     # (B, L, 4H)
    q = next_cond @ params['wq'] + params['bq']                    # (B, 1, 4H)
    attn = jnp.einsum('blh,bqh->blq', k, q) / math.sqrt(3 * H)     # (B, L, 1)
    attn = jax.nn.softmax(attn, axis=1)
    past_repr = jnp.sum(attn * past_seq, axis=1)                   # (B, 4H)
    inp = jnp.concatenate([past_repr, next_cond[:, 0, :]], axis=-1)
    return inp @ params['wo'] + params['bo']


if __name__ == "__main__":
    B, L, H = 2, 8, 32
    num_teams, num_venues, num_results = 10, 3, 3

    key = jax.random.PRNGKey(0)
    keys = jax.random.split(key, 12)

    # TODO(synk): out_proj is None (abstract) in ModelBase; instantiated here as
    #             Linear(7H, num_results) so the forward pass is runnable.
    params = {
        'team_embed':   jax.random.normal(keys[0], (num_teams, H), jnp.float32) * 0.1,
        'venue_embed':  jax.random.normal(keys[1], (num_venues, H), jnp.float32) * 0.1,
        'result_embed': jax.random.normal(keys[2], (num_results, H), jnp.float32) * 0.1,
        'wk': jax.random.normal(keys[3], (4 * H, 4 * H), jnp.float32) * 0.05,   # (in, out)
        'bk': jax.random.normal(keys[4], (1, 4 * H), jnp.float32) * 0.05,
        'wq': jax.random.normal(keys[5], (3 * H, 4 * H), jnp.float32) * 0.05,
        'bq': jax.random.normal(keys[6], (1, 4 * H), jnp.float32) * 0.05,
        'wo': jax.random.normal(keys[7], (7 * H, num_results), jnp.float32) * 0.05,
        'bo': jax.random.normal(keys[8], (1, num_results), jnp.float32) * 0.05,
    }

    ik = jax.random.split(keys[10], 7)
    inputs = {
        'past_matches': {
            'venue':    jax.random.randint(ik[0], (B, L), 0, num_venues),
            'team':     jax.random.randint(ik[1], (B, L), 0, num_teams),
            'opponent': jax.random.randint(ik[2], (B, L), 0, num_teams),
            'result':   jax.random.randint(ik[3], (B, L), 0, num_results),
        },
        'next_match_conditions': {
            'venue':    jax.random.randint(ik[4], (B, 1), 0, num_venues),
            'team':     jax.random.randint(ik[5], (B, 1), 0, num_teams),
            'opponent': jax.random.randint(ik[6], (B, 1), 0, num_teams),
        },
    }

    prepared = prepare_params(params, H)           # one-time folding / padding / bf16
    logits = model_forward(prepared, inputs)
    logits = jax.block_until_ready(logits)

    ref = _reference_forward(params, inputs, H)
    assert logits.shape == (B, num_results), logits.shape
    # bf16 folded tables + approx reciprocal in the kernel -> compare to the f32
    # reference with bf16-appropriate tolerance.
    assert jnp.allclose(logits, ref, rtol=5e-2, atol=2e-2), (logits, ref)

    print("KERNEL_OK")
</pallas_src>

<mosaic_0001>
module attributes {stable_mosaic.version = 11 : i64} {
  func.func @_fused_forward_kernel(%arg0: i32, %arg1: memref<8x8xi32, #tpu.memory_space<vmem>>, %arg2: memref<8x8xi32, #tpu.memory_space<vmem>>, %arg3: memref<8x8xi32, #tpu.memory_space<vmem>>, %arg4: memref<8x8xi32, #tpu.memory_space<vmem>>, %arg5: memref<8x1xi32, #tpu.memory_space<vmem>>, %arg6: memref<8x1xi32, #tpu.memory_space<vmem>>, %arg7: memref<8x1xi32, #tpu.memory_space<vmem>>, %arg8: memref<32x128xbf16, #tpu.memory_space<vmem>>, %arg9: memref<1x128xf32, #tpu.memory_space<vmem>>, %arg10: memref<32x128xbf16, #tpu.memory_space<vmem>>, %arg11: memref<1x128xf32, #tpu.memory_space<vmem>>, %arg12: memref<32x128xbf16, #tpu.memory_space<vmem>>, %arg13: memref<32x128xbf16, #tpu.memory_space<vmem>>, %arg14: memref<1x128xf32, #tpu.memory_space<vmem>>, %arg15: memref<8x128xf32, #tpu.memory_space<vmem>>) attributes {dimension_semantics = [#tpu.dimension_semantics<parallel>], iteration_bounds = array<i64: 1>, scalar_prefetch = 0 : i64, scratch_operands = 0 : i64, tpu.core_type = #tpu.core_type<tc>, window_params = [{transform_indices = @transform_0, window_bounds = array<i64: 8, 8>}, {transform_indices = @transform_1, window_bounds = array<i64: 8, 8>}, {transform_indices = @transform_2, window_bounds = array<i64: 8, 8>}, {transform_indices = @transform_3, window_bounds = array<i64: 8, 8>}, {transform_indices = @transform_4, window_bounds = array<i64: 8, 1>}, {transform_indices = @transform_5, window_bounds = array<i64: 8, 1>}, {transform_indices = @transform_6, window_bounds = array<i64: 8, 1>}, {pipeline_mode = #tpu.pipeline_mode<synchronous>, transform_indices = @transform_7, window_bounds = array<i64: 32, 128>}, {pipeline_mode = #tpu.pipeline_mode<synchronous>, transform_indices = @transform_8, window_bounds = array<i64: 1, 128>}, {pipeline_mode = #tpu.pipeline_mode<synchronous>, transform_indices = @transform_9, window_bounds = array<i64: 32, 128>}, {pipeline_mode = #tpu.pipeline_mode<synchronous>, transform_indices = @transform_10, window_bounds = array<i64: 1, 128>}, {pipeline_mode = #tpu.pipeline_mode<synchronous>, transform_indices = @transform_11, window_bounds = array<i64: 32, 128>}, {pipeline_mode = #tpu.pipeline_mode<synchronous>, transform_indices = @transform_12, window_bounds = array<i64: 32, 128>}, {pipeline_mode = #tpu.pipeline_mode<synchronous>, transform_indices = @transform_13, window_bounds = array<i64: 1, 128>}, {transform_indices = @transform_14, window_bounds = array<i64: 8, 128>}]} {
    %0 = tpu.iota {dimensions = array<i32: 2>} : vector<8x8x32xi32>
    %c0 = arith.constant 0 : index
    %c0_0 = arith.constant 0 : index
    %1 = vector.load %arg1[%c0, %c0_0] : memref<8x8xi32, #tpu.memory_space<vmem>>, vector<8x8xi32>
    %2 = vector.shape_cast %1 : vector<8x8xi32> to vector<8x8x1xi32>
    %3 = vector.broadcast %2 : vector<8x8x1xi32> to vector<8x8x32xi32>
    %4 = arith.cmpi eq, %0, %3 : vector<8x8x32xi32>
    %c0_1 = arith.constant 0 : index
    %c0_2 = arith.constant 0 : index
    %5 = vector.load %arg2[%c0_1, %c0_2] : memref<8x8xi32, #tpu.memory_space<vmem>>, vector<8x8xi32>
    %6 = vector.shape_cast %5 : vector<8x8xi32> to vector<8x8x1xi32>
    %c3_i32 = arith.constant 3 : i32
    %7 = vector.broadcast %c3_i32 : i32 to vector<8x8x1xi32>
    %8 = arith.addi %6, %7 : vector<8x8x1xi32>
    %9 = vector.broadcast %8 : vector<8x8x1xi32> to vector<8x8x32xi32>
    %10 = arith.cmpi eq, %0, %9 : vector<8x8x32xi32>
    %11 = arith.ori %4, %10 : vector<8x8x32xi1>
    %c0_3 = arith.constant 0 : index
    %c0_4 = arith.constant 0 : index
    %12 = vector.load %arg3[%c0_3, %c0_4] : memref<8x8xi32, #tpu.memory_space<vmem>>, vector<8x8xi32>
    %13 = vector.shape_cast %12 : vector<8x8xi32> to vector<8x8x1xi32>
    %c13_i32 = arith.constant 13 : i32
    %14 = vector.broadcast %c13_i32 : i32 to vector<8x8x1xi32>
    %15 = arith.addi %13, %14 : vector<8x8x1xi32>
    %16 = vector.broadcast %15 : vector<8x8x1xi32> to vector<8x8x32xi32>
    %17 = arith.cmpi eq, %0, %16 : vector<8x8x32xi32>
    %18 = arith.ori %11, %17 : vector<8x8x32xi1>
    %c0_5 = arith.constant 0 : index
    %c0_6 = arith.constant 0 : index
    %19 = vector.load %arg4[%c0_5, %c0_6] : memref<8x8xi32, #tpu.memory_space<vmem>>, vector<8x8xi32>
    %20 = vector.shape_cast %19 : vector<8x8xi32> to vector<8x8x1xi32>
    %c23_i32 = arith.constant 23 : i32
    %21 = vector.broadcast %c23_i32 : i32 to vector<8x8x1xi32>
    %22 = arith.addi %20, %21 : vector<8x8x1xi32>
    %23 = vector.broadcast %22 : vector<8x8x1xi32> to vector<8x8x32xi32>
    %24 = arith.cmpi eq, %0, %23 : vector<8x8x32xi32>
    %25 = arith.ori %18, %24 : vector<8x8x32xi1>
    %26 = tpu.iota {dimensions = array<i32: 1>} : vector<8x32xi32>
    %c0_7 = arith.constant 0 : index
    %c0_8 = arith.constant 0 : index
    %27 = vector.load %arg5[%c0_7, %c0_8] : memref<8x1xi32, #tpu.memory_space<vmem>>, vector<8x1xi32>
    %28 = vector.broadcast %27 : vector<8x1xi32> to vector<8x32xi32>
    %29 = arith.cmpi eq, %26, %28 : vector<8x32xi32>
    %c0_9 = arith.constant 0 : index
    %c0_10 = arith.constant 0 : index
    %30 = vector.load %arg6[%c0_9, %c0_10] : memref<8x1xi32, #tpu.memory_space<vmem>>, vector<8x1xi32>
    %c3_i32_11 = arith.constant 3 : i32
    %31 = vector.broadcast %c3_i32_11 : i32 to vector<8x1xi32>
    %32 = arith.addi %30, %31 : vector<8x1xi32>
    %33 = vector.broadcast %32 : vector<8x1xi32> to vector<8x32xi32>
    %34 = arith.cmpi eq, %26, %33 : vector<8x32xi32>
    %35 = arith.ori %29, %34 : vector<8x32xi1>
    %c0_12 = arith.constant 0 : index
    %c0_13 = arith.constant 0 : index
    %36 = vector.load %arg7[%c0_12, %c0_13] : memref<8x1xi32, #tpu.memory_space<vmem>>, vector<8x1xi32>
    %c13_i32_14 = arith.constant 13 : i32
    %37 = vector.broadcast %c13_i32_14 : i32 to vector<8x1xi32>
    %38 = arith.addi %36, %37 : vector<8x1xi32>
    %39 = vector.broadcast %38 : vector<8x1xi32> to vector<8x32xi32>
    %40 = arith.cmpi eq, %26, %39 : vector<8x32xi32>
    %41 = arith.ori %35, %40 : vector<8x32xi1>
    %42 = arith.extui %41 : vector<8x32xi1> to vector<8x32xi32>
    %43 = arith.sitofp %42 : vector<8x32xi32> to vector<8x32xf32>
    %44 = arith.truncf %43 : vector<8x32xf32> to vector<8x32xbf16>
    %45 = arith.extui %25 : vector<8x8x32xi1> to vector<8x8x32xi32>
    %46 = arith.sitofp %45 : vector<8x8x32xi32> to vector<8x8x32xf32>
    %47 = arith.truncf %46 : vector<8x8x32xf32> to vector<8x8x32xbf16>
    %48 = vector.shape_cast %47 : vector<8x8x32xbf16> to vector<64x32xbf16>
    %c0_15 = arith.constant 0 : index
    %c0_16 = arith.constant 0 : index
    %49 = vector.load %arg8[%c0_15, %c0_16] : memref<32x128xbf16, #tpu.memory_space<vmem>>, vector<32x128xbf16>
    %cst = arith.constant dense<0.000000e+00> : vector<64x128xf32>
    %50 = tpu.matmul %48, %49, %cst {dimension_numbers = #tpu.dot_dimension_numbers<[1], [0], [0], [1], [0, 0, 1, 1], [], []>} : vector<64x32xbf16>, vector<32x128xbf16>, vector<64x128xf32> -> vector<64x128xf32>
    %c0_17 = arith.constant 0 : index
    %c0_18 = arith.constant 0 : index
    %51 = vector.load %arg9[%c0_17, %c0_18] : memref<1x128xf32, #tpu.memory_space<vmem>>, vector<1x128xf32>
    %52 = vector.broadcast %51 : vector<1x128xf32> to vector<64x128xf32>
    %53 = arith.addf %50, %52 : vector<64x128xf32>
    %c0_19 = arith.constant 0 : index
    %c0_20 = arith.constant 0 : index
    %54 = vector.load %arg10[%c0_19, %c0_20] : memref<32x128xbf16, #tpu.memory_space<vmem>>, vector<32x128xbf16>
    %cst_21 = arith.constant dense<0.000000e+00> : vector<8x128xf32>
    %55 = tpu.matmul %44, %54, %cst_21 {dimension_numbers = #tpu.dot_dimension_numbers<[1], [0], [0], [1], [0, 0, 1, 1], [], []>} : vector<8x32xbf16>, vector<32x128xbf16>, vector<8x128xf32> -> vector<8x128xf32>
    %c0_22 = arith.constant 0 : index
    %c0_23 = arith.constant 0 : index
    %56 = vector.load %arg11[%c0_22, %c0_23] : memref<1x128xf32, #tpu.memory_space<vmem>>, vector<1x128xf32>
    %57 = vector.broadcast %56 : vector<1x128xf32> to vector<8x128xf32>
    %58 = arith.addf %55, %57 : vector<8x128xf32>
    %59 = vector.shape_cast %53 : vector<64x128xf32> to vector<8x8x128xf32>
    %60 = vector.shape_cast %58 : vector<8x128xf32> to vector<8x1x128xf32>
    %61 = vector.broadcast %60 : vector<8x1x128xf32> to vector<8x8x128xf32>
    %62 = arith.mulf %59, %61 : vector<8x8x128xf32>
    %cst_24 = arith.constant dense<0.000000e+00> : vector<8x8xf32>
    %63 = vector.multi_reduction <add>, %62, %cst_24 [2] : vector<8x8x128xf32> to vector<8x8xf32>
    %cst_25 = arith.constant dense<0xFF800000> : vector<8xf32>
    %64 = vector.multi_reduction <maximumf>, %63, %cst_25 [1] : vector<8x8xf32> to vector<8xf32>
    %65 = vector.shape_cast %64 : vector<8xf32> to vector<8x1xf32>
    %66 = vector.broadcast %65 : vector<8x1xf32> to vector<8x8xf32>
    %67 = arith.subf %63, %66 : vector<8x8xf32>
    %68 = math.exp %67 : vector<8x8xf32>
    %cst_26 = arith.constant dense<0.000000e+00> : vector<8xf32>
    %69 = vector.multi_reduction <add>, %68, %cst_26 [1] : vector<8x8xf32> to vector<8xf32>
    %70 = vector.shape_cast %69 : vector<8xf32> to vector<8x1xf32>
    %71 = tpu.reciprocal %70 {approx = true} : vector<8x1xf32> -> vector<8x1xf32>
    %72 = vector.broadcast %71 : vector<8x1xf32> to vector<8x8xf32>
    %73 = arith.mulf %68, %72 : vector<8x8xf32>
    %74 = vector.shape_cast %73 : vector<8x8xf32> to vector<8x8x1xf32>
    %cst_27 = arith.constant 0.000000e+00 : f32
    %75 = vector.shape_cast %74 : vector<8x8x1xf32> to vector<8x8x1xf32>
    %76 = vector.broadcast %75 : vector<8x8x1xf32> to vector<8x8x32xf32>
    %77 = vector.broadcast %cst_27 : f32 to vector<8x8x32xf32>
    %78 = arith.select %25, %76, %77 : vector<8x8x32xi1>, vector<8x8x32xf32>
    %cst_28 = arith.constant dense<0.000000e+00> : vector<8x32xf32>
    %79 = vector.multi_reduction <add>, %78, %cst_28 [1] : vector<8x8x32xf32> to vector<8x32xf32>
    %80 = arith.truncf %79 : vector<8x32xf32> to vector<8x32xbf16>
    %c0_29 = arith.constant 0 : index
    %c0_30 = arith.constant 0 : index
    %81 = vector.load %arg12[%c0_29, %c0_30] : memref<32x128xbf16, #tpu.memory_space<vmem>>, vector<32x128xbf16>
    %cst_31 = arith.constant dense<0.000000e+00> : vector<8x128xf32>
    %82 = tpu.matmul %80, %81, %cst_31 {dimension_numbers = #tpu.dot_dimension_numbers<[1], [0], [0], [1], [0, 0, 1, 1], [], []>} : vector<8x32xbf16>, vector<32x128xbf16>, vector<8x128xf32> -> vector<8x128xf32>
    %c0_32 = arith.constant 0 : index
    %c0_33 = arith.constant 0 : index
    %83 = vector.load %arg13[%c0_32, %c0_33] : memref<32x128xbf16, #tpu.memory_space<vmem>>, vector<32x128xbf16>
    %cst_34 = arith.constant dense<0.000000e+00> : vector<8x128xf32>
    %84 = tpu.matmul %44, %83, %cst_34 {dimension_numbers = #tpu.dot_dimension_numbers<[1], [0], [0], [1], [0, 0, 1, 1], [], []>} : vector<8x32xbf16>, vector<32x128xbf16>, vector<8x128xf32> -> vector<8x128xf32>
    %85 = arith.addf %82, %84 : vector<8x128xf32>
    %c0_35 = arith.constant 0 : index
    %c0_36 = arith.constant 0 : index
    %86 = vector.load %arg14[%c0_35, %c0_36] : memref<1x128xf32, #tpu.memory_space<vmem>>, vector<1x128xf32>
    %87 = vector.broadcast %86 : vector<1x128xf32> to vector<8x128xf32>
    %88 = arith.addf %85, %87 : vector<8x128xf32>
    %c0_37 = arith.constant 0 : index
    %c0_38 = arith.constant 0 : index
    %89 = vector.load %arg15[%c0_37, %c0_38] : memref<8x128xf32, #tpu.memory_space<vmem>>, vector<8x128xf32>
    tpu.vector_store %arg15[%c0_37, %c0_38], %88 {strides = array<i32>} : memref<8x128xf32, #tpu.memory_space<vmem>>, vector<8x128xf32>,
    return
  }
  func.func @transform_0(%arg0: i32) -> (i32, i32) {
    %c0_i32 = arith.constant 0 : i32
    %c0_i32_0 = arith.constant 0 : i32
    return %arg0, %c0_i32 : i32, i32
  }
  func.func @transform_1(%arg0: i32) -> (i32, i32) {
    %c0_i32 = arith.constant 0 : i32
    %c0_i32_0 = arith.constant 0 : i32
    return %arg0, %c0_i32 : i32, i32
  }
  func.func @transform_2(%arg0: i32) -> (i32, i32) {
    %c0_i32 = arith.constant 0 : i32
    %c0_i32_0 = arith.constant 0 : i32
    return %arg0, %c0_i32 : i32, i32
  }
  func.func @transform_3(%arg0: i32) -> (i32, i32) {
    %c0_i32 = arith.constant 0 : i32
    %c0_i32_0 = arith.constant 0 : i32
    return %arg0, %c0_i32 : i32, i32
  }
  func.func @transform_4(%arg0: i32) -> (i32, i32) {
    %c0_i32 = arith.constant 0 : i32
    %c0_i32_0 = arith.constant 0 : i32
    return %arg0, %c0_i32 : i32, i32
  }
  func.func @transform_5(%arg0: i32) -> (i32, i32) {
    %c0_i32 = arith.constant 0 : i32
    %c0_i32_0 = arith.constant 0 : i32
    return %arg0, %c0_i32 : i32, i32
  }
  func.func @transform_6(%arg0: i32) -> (i32, i32) {
    %c0_i32 = arith.constant 0 : i32
    %c0_i32_0 = arith.constant 0 : i32
    return %arg0, %c0_i32 : i32, i32
  }
  func.func @transform_7(%arg0: i32) -> (i32, i32) {
    %c0_i32 = arith.constant 0 : i32
    %c0_i32_0 = arith.constant 0 : i32
    %c0_i32_1 = arith.constant 0 : i32
    return %c0_i32, %c0_i32_0 : i32, i32
  }
  func.func @transform_8(%arg0: i32) -> (i32, i32) {
    %c0_i32 = arith.constant 0 : i32
    %c0_i32_0 = arith.constant 0 : i32
    %c0_i32_1 = arith.constant 0 : i32
    return %c0_i32, %c0_i32_0 : i32, i32
  }
  func.func @transform_9(%arg0: i32) -> (i32, i32) {
    %c0_i32 = arith.constant 0 : i32
    %c0_i32_0 = arith.constant 0 : i32
    %c0_i32_1 = arith.constant 0 : i32
    return %c0_i32, %c0_i32_0 : i32, i32
  }
  func.func @transform_10(%arg0: i32) -> (i32, i32) {
    %c0_i32 = arith.constant 0 : i32
    %c0_i32_0 = arith.constant 0 : i32
    %c0_i32_1 = arith.constant 0 : i32
    return %c0_i32, %c0_i32_0 : i32, i32
  }
  func.func @transform_11(%arg0: i32) -> (i32, i32) {
    %c0_i32 = arith.constant 0 : i32
    %c0_i32_0 = arith.constant 0 : i32
    %c0_i32_1 = arith.constant 0 : i32
    return %c0_i32, %c0_i32_0 : i32, i32
  }
  func.func @transform_12(%arg0: i32) -> (i32, i32) {
    %c0_i32 = arith.constant 0 : i32
    %c0_i32_0 = arith.constant 0 : i32
    %c0_i32_1 = arith.constant 0 : i32
    return %c0_i32, %c0_i32_0 : i32, i32
  }
  func.func @transform_13(%arg0: i32) -> (i32, i32) {
    %c0_i32 = arith.constant 0 : i32
    %c0_i32_0 = arith.constant 0 : i32
    %c0_i32_1 = arith.constant 0 : i32
    return %c0_i32, %c0_i32_0 : i32, i32
  }
  func.func @transform_14(%arg0: i32) -> (i32, i32) {
    %c0_i32 = arith.constant 0 : i32
    %c0_i32_0 = arith.constant 0 : i32
    return %arg0, %c0_i32 : i32, i32
  }
}

</mosaic_0001>

<bundles_post_ra>
// kernel: tpu_custom_call.1
= control target key start
LH: loop header
LB: loop body
LE: loop exit
PB: predicated region body
PF: predicated region fallthrough
CT: control target
= control target key end

     0   :  { %19 = vsyncpa [#allocation3], 0  ;;  %s2102_s0 = inlined_call_operand.hbm [shape: s32[8,8], index: 0, kind: input, shape index: {}]   ;;  %s2103_s1 = inlined_call_operand.hbm [shape: s32[8,8], index: 1, kind: input, shape index: {}]   ;;  %s2104_s2 = inlined_call_operand.hbm [shape: s32[8,8], index: 2, kind: input, shape index: {}]   ;;  %s2105_s3 = inlined_call_operand.hbm [shape: s32[8,8], index: 3, kind: input, shape index: {}]   ;;  %s2106_s4 = inlined_call_operand.vmem [shape: s32[8,1], index: 4, kind: input, shape index: {}]   ;;  %s2107_s5 = inlined_call_operand.vmem [shape: s32[8,1], index: 5, kind: input, shape index: {}]   ;;  %s2108_s6 = inlined_call_operand.vmem [shape: s32[8,1], index: 6, kind: input, shape index: {}]   ;;  %s2109_s7 = inlined_call_operand.vmem [shape: bf16[32,128], index: 7, kind: input, shape index: {}]   ;;  %s2110_s8 = inlined_call_operand.hbm [shape: f32[1,128], index: 8, kind: input, shape index: {}]   ;;  %s2111_s9 = inlined_call_operand.vmem [shape: bf16[32,128], index: 9, kind: input, shape index: {}]   ;;  %s2112_s10 = inlined_call_operand.hbm [shape: f32[1,128], index: 10, kind: input, shape index: {}]   ;;  %s2113_s11 = inlined_call_operand.vmem [shape: bf16[32,128], index: 11, kind: input, shape index: {}]   ;;  %s2114_s12 = inlined_call_operand.vmem [shape: bf16[32,128], index: 12, kind: input, shape index: {}]   ;;  %s2115_s13 = inlined_call_operand.vmem [shape: f32[1,128], index: 13, kind: input, shape index: {}]   ;;  %s2116_s14 = inlined_call_operand.hbm [shape: f32[8,128], index: 14, kind: output, shape index: {}]  }
   0x1   :  { %20 = vsyncpa [#allocation6], 0 }
   0x2   :  { %21 = vsyncpa [#allocation9], 0 }
   0x3   :  { %22 = vsyncpa [#allocation12], 0 }
   0x4   :  { %23 = vsyncpa [#allocation4], 0  ;;  %s1592_s29 = smov [#allocation5]   ;;  %s1593_s15 = smov [#allocation8]  }
   0x5   :  { %s40_s30 = sshll.u32 %s1592_s29, 4  ;;  %s60_s16 = sshll.u32 %s1593_s15, 4  ;;  %s41_s30 = int_to_ptr.vmem [resolvable:$true] %s40_s30  ;;  %s61_s16 = int_to_ptr.vmem [resolvable:$true] %s60_s16 }
   0x6   :  { %s1428_s19 = scalar_lea.hbm %s2103_s1, 128 }
   0x7   :  { %p1429_p0 = scmp.ne.s32.totalorder %s2103_s1, %s1428_s19  ;;  %p1432_p1 = scmp.lt.u32.totalorder %s1428_s19, %s2103_s1 }
   0x9   :  { %p1434_p2 = pnand %p1432_p1, %p1429_p0 }
   0xb   :  { %1437 = shalt.err (!%p1434_p2)
}
   0xc   :  { %s1438_s24 = scalar_lea.vmem %s41_s30, 128  ;;  %p1443_p4 = scmp.lt.s32.totalorder %s41_s30, %s41_s30 }
   0xd   :  { %p1439_p3 = scmp.ne.s32.totalorder %s41_s30, %s1438_s24  ;;  %p1444_p5 = scmp.lt.s32.totalorder %s1438_s24, %s1438_s24 }
   0xf   :  { %p1445_p6 = por %p1444_p5, %p1443_p4 }
  0x11   :  { %p1446_p7 = pnand %p1445_p6, %p1439_p3 }
  0x13   :  { %1449 = shalt.err (!%p1446_p7)
}
  0x14   :  { %43 = dma.hbm_to_vmem [thread:$0]  %s2103_s1, 128, %s41_s30, [#allocation6]  }
  0x15   :  { %s1450_s29 = scalar_lea.hbm %s2105_s3, 128 }
  0x16   :  { %p1451_p8 = scmp.ne.s32.totalorder %s2105_s3, %s1450_s29  ;;  %p1454_p9 = scmp.lt.u32.totalorder %s1450_s29, %s2105_s3 }
  0x18   :  { %p1456_p10 = pnand %p1454_p9, %p1451_p8 }
  0x1a   :  { %1459 = shalt.err (!%p1456_p10)
}
  0x1b   :  { %s1460_s20 = scalar_lea.vmem %s61_s16, 128  ;;  %p1465_p12 = scmp.lt.s32.totalorder %s61_s16, %s61_s16 }
  0x1c   :  { %p1461_p11 = scmp.ne.s32.totalorder %s61_s16, %s1460_s20  ;;  %p1466_p13 = scmp.lt.s32.totalorder %s1460_s20, %s1460_s20 }
  0x1e   :  { %p1467_p0 = por %p1466_p13, %p1465_p12 }
  0x20   :  { %p1468_p1 = pnand %p1467_p0, %p1461_p11 }
  0x22   :  { %1471 = shalt.err (!%p1468_p1)
}
  0x23   :  { %63 = dma.hbm_to_vmem [thread:$0]  %s2105_s3, 128, %s61_s16, [#allocation9]  }
  0x24   :  { %s1594_s21 = smov [#allocation2]   ;;  %s1595_s23 = smov [#allocation7]  }
  0x25   :  { %s30_s22 = sshll.u32 %s1594_s21, 4  ;;  %s50_s24 = sshll.u32 %s1595_s23, 4  ;;  %s31_s22 = int_to_ptr.vmem [resolvable:$true] %s30_s22  ;;  %s51_s24 = int_to_ptr.vmem [resolvable:$true] %s50_s24 }
  0x26   :  { %s1472_s27 = scalar_lea.hbm %s2102_s0, 128 }
  0x27   :  { %p1473_p2 = scmp.ne.s32.totalorder %s2102_s0, %s1472_s27  ;;  %p1476_p3 = scmp.lt.u32.totalorder %s1472_s27, %s2102_s0 }
  0x29   :  { %p1478_p4 = pnand %p1476_p3, %p1473_p2 }
  0x2b   :  { %1481 = shalt.err (!%p1478_p4)
}
  0x2c   :  { %s1482_s3 = scalar_lea.vmem %s31_s22, 128  ;;  %p1487_p6 = scmp.lt.s32.totalorder %s31_s22, %s31_s22 }
  0x2d   :  { %p1483_p5 = scmp.ne.s32.totalorder %s31_s22, %s1482_s3  ;;  %p1488_p7 = scmp.lt.s32.totalorder %s1482_s3, %s1482_s3 }
  0x2f   :  { %p1489_p8 = por %p1488_p7, %p1487_p6 }
  0x31   :  { %p1490_p9 = pnand %p1489_p8, %p1483_p5 }
  0x33   :  { %1493 = shalt.err (!%p1490_p9)
}
  0x34   :  { %33 = dma.hbm_to_vmem [thread:$0]  %s2102_s0, 128, %s31_s22, [#allocation3]  }
  0x35   :  { %s1494_s1 = scalar_lea.hbm %s2104_s2, 128 }
  0x36   :  { %p1495_p10 = scmp.ne.s32.totalorder %s2104_s2, %s1494_s1  ;;  %p1498_p11 = scmp.lt.u32.totalorder %s1494_s1, %s2104_s2 }
  0x38   :  { %p1500_p12 = pnand %p1498_p11, %p1495_p10 }
  0x3a   :  { %1503 = shalt.err (!%p1500_p12)
}
  0x3b   :  { %s1504_s26 = scalar_lea.vmem %s51_s24, 128  ;;  %p1509_p0 = scmp.lt.s32.totalorder %s51_s24, %s51_s24 }
  0x3c   :  { %p1505_p13 = scmp.ne.s32.totalorder %s51_s24, %s1504_s26  ;;  %p1510_p1 = scmp.lt.s32.totalorder %s1504_s26, %s1504_s26 }
  0x3e   :  { %p1511_p2 = por %p1510_p1, %p1509_p0 }
  0x40   :  { %p1512_p3 = pnand %p1511_p2, %p1505_p13 }
  0x42   :  { %1515 = shalt.err (!%p1512_p3)
}
  0x43   :  { %53 = dma.hbm_to_vmem [thread:$0]  %s2104_s2, 128, %s51_s24, [#allocation6]  }
  0x44   :  { %s1596_s27 = smov [#allocation10]   ;;  %s1597_s29 = smov [#allocation11]  }
  0x45   :  { %s78_s28 = sshll.u32 %s1596_s27, 4  ;;  %s90_s15 = sshll.u32 %s1597_s29, 4  ;;  %s79_s28 = int_to_ptr.vmem [resolvable:$true] %s78_s28  ;;  %s91_s15 = int_to_ptr.vmem [resolvable:$true] %s90_s15 }
  0x46   :  { %s1516_s16 = scalar_lea.hbm %s2110_s8, 16 }
  0x47   :  { %p1517_p4 = scmp.ne.s32.totalorder %s2110_s8, %s1516_s16  ;;  %p1520_p5 = scmp.lt.u32.totalorder %s1516_s16, %s2110_s8 }
  0x49   :  { %p1522_p6 = pnand %p1520_p5, %p1517_p4 }
  0x4b   :  { %1525 = shalt.err (!%p1522_p6)
}
  0x4c   :  { %s1526_s2 = scalar_lea.vmem %s79_s28, 16  ;;  %s1530_s24 = scalar_lea.vmem %s79_s28, 32 }
  0x4d   :  { %p1527_p7 = scmp.ne.s32.totalorder %s79_s28, %s1526_s2  ;;  %p1531_p8 = scmp.lt.s32.totalorder %s79_s28, %s79_s28 }
  0x4e   :  { %p1532_p9 = scmp.lt.s32.totalorder %s1530_s24, %s1526_s2 }
  0x50   :  { %p1533_p10 = por %p1532_p9, %p1531_p8 }
  0x52   :  { %p1534_p11 = pnand %p1533_p10, %p1527_p7 }
  0x54   :  { %1537 = shalt.err (!%p1534_p11)
}
  0x55   :  { %81 = dma.hbm_to_vmem [thread:$0]  %s2110_s8, 16, %s79_s28, [#allocation9]  }
  0x56   :  { %s1538_s26 = scalar_lea.hbm %s2112_s10, 16 }
  0x57   :  { %p1539_p12 = scmp.ne.s32.totalorder %s2112_s10, %s1538_s26  ;;  %p1542_p13 = scmp.lt.u32.totalorder %s1538_s26, %s2112_s10 }
  0x59   :  { %p1544_p0 = pnand %p1542_p13, %p1539_p12 }
  0x5b   :  { %1547 = shalt.err (!%p1544_p0)
}
  0x5c   :  { %s1548_s17 = scalar_lea.vmem %s91_s15, 16  ;;  %s1552_s3 = scalar_lea.vmem %s91_s15, 32 }
  0x5d   :  { %p1549_p1 = scmp.ne.s32.totalorder %s91_s15, %s1548_s17  ;;  %p1553_p2 = scmp.lt.s32.totalorder %s91_s15, %s91_s15 }
  0x5e   :  { %p1554_p3 = scmp.lt.s32.totalorder %s1552_s3, %s1548_s17 }
  0x60   :  { %p1555_p4 = por %p1554_p3, %p1553_p2 }
  0x62   :  { %p1556_p5 = pnand %p1555_p4, %p1549_p1 }
  0x64   :  { %1559 = shalt.err (!%p1556_p5)
}
  0x65   :  { %93 = dma.hbm_to_vmem [thread:$0]  %s2112_s10, 16, %s91_s15, [#allocation12]  }
  0x66   :  { %1582 = dma.done.wait [#allocation3], 128  }
  0x67   :  { %1583 = vsyncadd [#allocation3], 4294967168 }
  0x68   :  { %1584 = dma.done.wait [#allocation6], 256  }
  0x69   :  { %1585 = vsyncadd [#allocation6], 4294967040 }
  0x6a   :  { %1586 = dma.done.wait [#allocation9], 144  }
  0x6b   :  { %1587 = vsyncadd [#allocation9], 4294967152 }
  0x6c   :  { %1588 = dma.done.wait [#allocation12], 16  }
  0x6d   :  { %1589 = vsyncadd [#allocation12], 4294967280  ;;  %v119_v0 = vlaneseq  ;;  %v1598_v1 = vmov 0   ;;  %v429_v4 = vld [vmem:[%s2106_s4] sm:$0xff]  ;;  %v1765_v9 = vld [vmem:[#allocation5] sm:$0xff]  ;;  %v1599_v20 = vmov 0.0  }
  0x6e   :  { %1400 = vset.pattern.permute.xlu0 %v1598_v1  ;;  %1401 = vset.pattern.permute.xlu1 %v1598_v1  ;;  %v441_v5 = vld [vmem:[%s2108_s6] sm:$0xff]  ;;  %v1782_v16 = vld [vmem:[#allocation7] sm:$0xff]  ;;  %v1403_v22 = vld [vmem:[%s2111_s9 + $0x8] sm:$0xff]   ;;  %vm2117_vm0 = vmmov 0   ;;  %vm2118_vm6 = vcmask 261120   ;;  %s1602_s29 = smov [#allocation13]  }
  0x6f   :  { %v1751_v2 = vshrl.u32 %v119_v0, 7  ;;  %v434_v6 = vld [vmem:[%s2107_s5] sm:$0xff]  ;;  %431 = vperm.xlu0 %1400, %v429_v4   ;;  %v442_v7 = vadd.s32 13, %v441_v5  ;;  %1365 = vmatprep.subr.bf16.mxu1 %v1599_v20  ;;  %v348_v27 = vld [vmem:[#allocation8] sm:$0xff]  ;;  %v1407_v44 = vld [vmem:[%s2109_s7 + $0x8] sm:$0xff]   ;;  %v1867_v58 = vand.u32 127, %v119_v0 }
  0x70   :  { %v435_v8 = vadd.s32 3, %v434_v6  ;;  %v1402_v17 = vld [vmem:[%s2111_s9] sm:$0xff]   ;;  %1369 = vmatprep.mubr.msk.bf16.mxu1 %vm2117_vm0, %v1599_v20  ;;  %v1405_v6 = vld [vmem:[%s2114_s12 + $0x8] sm:$0xff]   ;;  %s1291_s17 = sshll.u32 %s1602_s29, 4  ;;  %s1292_s17 = int_to_ptr.vmem [resolvable:$true] %s1291_s17 }
  0x71   :  { %v1754_v3 = vsub.s32 0, %v1751_v2  ;;  %v1768_v10 = vsub.s32 1, %v1751_v2  ;;  %444 = vperm.xlu1 %1401, %v442_v7   ;;  %v1773_v12 = vsub.s32 2, %v1751_v2  ;;  %v1776_v13 = vsub.s32 3, %v1751_v2  ;;  %v1792_v21 = vld [vmem:[#allocation2] sm:$0xff]  ;;  %1366 = vmatpush3.bf16.msra.mxu1 %v1402_v17  ;;  %s1560_s3 = scalar_lea.vmem %s1292_s17, 128  ;;  %p1565_p7 = scmp.lt.s32.totalorder %s1292_s17, %s1292_s17 }
  0x72   :  { %1367 = vmatprep.subr.bf16.mxu1 %v1599_v20  ;;  %v1819_v34 = vsub.s32 4, %v1751_v2  ;;  %v1823_v36 = vsub.s32 5, %v1751_v2  ;;  %v1406_v37 = vld [vmem:[%s2109_s7] sm:$0xff]   ;;  %v1831_v39 = vsub.s32 6, %v1751_v2  ;;  %v1836_v41 = vsub.s32 7, %v1751_v2  ;;  %p1561_p6 = scmp.ne.s32.totalorder %s1292_s17, %s1560_s3  ;;  %p1566_p8 = scmp.lt.s32.totalorder %s1560_s3, %s1560_s3 }
  0x73   :  { %v190_v11 = vrot.slane %v1765_v9, %v1754_v3  ;;  %437 = vperm.xlu0 %1400, %v435_v8   ;;  %v197_v14 = vrot.slane %v1765_v9, %v1768_v10  ;;  %v204_v15 = vrot.slane %v1765_v9, %v1773_v12  ;;  %v211_v18 = vrot.slane %v1765_v9, %v1776_v13  ;;  %v1404_v0 = vld [vmem:[%s2114_s12] sm:$0xff]  }
  0x74   :  { %v271_v19 = vrot.slane %v1782_v16, %v1754_v3  ;;  %v278_v23 = vrot.slane %v1782_v16, %v1768_v10  ;;  %v125_v24 = vrot.slane %v1792_v21, %v1754_v3  ;;  %v132_v25 = vrot.slane %v1792_v21, %v1768_v10  ;;  %1353 = vmatprep.subr.bf16.mxu0 %v1406_v37  ;;  %p1567_p9 = por %p1566_p8, %p1565_p7 }
  0x75   :  { %192 = vbcast.lane.b32.xlu1 %v190_v11, 256  ;;  %1368 = vmatpush3.bf16.msra.mxu1 %v1403_v22  ;;  %v285_v26 = vrot.slane %v1782_v16, %v1773_v12  ;;  %v292_v28 = vrot.slane %v1782_v16, %v1776_v13  ;;  %v352_v29 = vrot.slane %v348_v27, %v1754_v3 }
  0x76   :  { %1373 = vmatprep.subr.bf16.mxu1 %v1599_v20  ;;  %v359_v30 = vrot.slane %v348_v27, %v1768_v10  ;;  %v139_v31 = vrot.slane %v1792_v21, %v1773_v12  ;;  %v146_v32 = vrot.slane %v1792_v21, %v1776_v13  ;;  %v366_v33 = vrot.slane %v348_v27, %v1773_v12  ;;  %p1568_p10 = pnand %p1567_p9, %p1561_p6 }
  0x77   :  { %199 = vbcast.lane.b32.xlu0 %v197_v14, 256  ;;  %v373_v35 = vrot.slane %v348_v27, %v1776_v13  ;;  %v218_v38 = vrot.slane %v1765_v9, %v1819_v34  ;;  %v225_v40 = vrot.slane %v1765_v9, %v1823_v36  ;;  %1354 = vmatpush3.bf16.msra.mxu0 %v1406_v37 }
  0x78   :  { %v232_v42 = vrot.slane %v1765_v9, %v1831_v39  ;;  %v239_v43 = vrot.slane %v1765_v9, %v1836_v41  ;;  %v299_v45 = vrot.slane %v1782_v16, %v1819_v34  ;;  %1355 = vmatprep.subr.bf16.mxu0 %v1407_v44  ;;  %v306_v46 = vrot.slane %v1782_v16, %v1823_v36 }
  0x79   :  { %206 = vbcast.lane.b32.xlu1 %v204_v15, 256  ;;  %v153_v47 = vrot.slane %v1792_v21, %v1819_v34  ;;  %v160_v48 = vrot.slane %v1792_v21, %v1823_v36  ;;  %v313_v49 = vrot.slane %v1782_v16, %v1831_v39  ;;  %v320_v50 = vrot.slane %v1782_v16, %v1836_v41 }
  0x7a   :  { %v380_v51 = vrot.slane %v348_v27, %v1819_v34  ;;  %v387_v52 = vrot.slane %v348_v27, %v1823_v36  ;;  %v167_v53 = vrot.slane %v1792_v21, %v1831_v39  ;;  %v174_v54 = vrot.slane %v1792_v21, %v1836_v41 }
  0x7b   :  { %213 = vbcast.lane.b32.xlu0 %v211_v18, 256  ;;  %1356 = vmatpush3.bf16.msra.mxu0 %v1407_v44  ;;  %v394_v55 = vrot.slane %v348_v27, %v1831_v39  ;;  %v401_v56 = vrot.slane %v348_v27, %v1836_v41 }
  0x7c   :  { %1381 = vmatprep.subr.bf16.mxu0 %v1599_v20 }
  0x7d   :  { %273 = vbcast.lane.b32.xlu1 %v271_v19, 256 }
  0x7f   :  { %280 = vbcast.lane.b32.xlu0 %v278_v23, 256 }
  0x81   :  { %127 = vbcast.lane.b32.xlu1 %v125_v24, 256 }
  0x83   :  { %134 = vbcast.lane.b32.xlu0 %v132_v25, 256 }
  0x85   :  { %287 = vbcast.lane.b32.xlu1 %v285_v26, 256 }
  0x87   :  { %294 = vbcast.lane.b32.xlu0 %v292_v28, 256 }
  0x89   :  { %354 = vbcast.lane.b32.xlu1 %v352_v29, 256 }
  0x8b   :  { %361 = vbcast.lane.b32.xlu0 %v359_v30, 256 }
  0x8d   :  { %141 = vbcast.lane.b32.xlu1 %v139_v31, 256 }
  0x8f   :  { %148 = vbcast.lane.b32.xlu0 %v146_v32, 256 }
  0x91   :  { %368 = vbcast.lane.b32.xlu1 %v366_v33, 256 }
  0x93   :  { %375 = vbcast.lane.b32.xlu0 %v373_v35, 256 }
  0x95   :  { %220 = vbcast.lane.b32.xlu1 %v218_v38, 256 }
  0x97   :  { %227 = vbcast.lane.b32.xlu0 %v225_v40, 256 }
  0x99   :  { %234 = vbcast.lane.b32.xlu1 %v232_v42, 256 }
  0x9b   :  { %241 = vbcast.lane.b32.xlu0 %v239_v43, 256 }
  0x9d   :  { %301 = vbcast.lane.b32.xlu1 %v299_v45, 256 }
  0x9f   :  { %308 = vbcast.lane.b32.xlu0 %v306_v46, 256 }
  0xa1   :  { %155 = vbcast.lane.b32.xlu1 %v153_v47, 256  ;;  %v2130_v47 = vmov 0 }
  0xa3   :  { %162 = vbcast.lane.b32.xlu0 %v160_v48, 256 }
  0xa5   :  { %315 = vbcast.lane.b32.xlu1 %v313_v49, 256 }
  0xa7   :  { %322 = vbcast.lane.b32.xlu0 %v320_v50, 256 }
  0xa9   :  { %382 = vbcast.lane.b32.xlu1 %v380_v51, 256 }
  0xab   :  { %389 = vbcast.lane.b32.xlu0 %v387_v52, 256 }
  0xad   :  { %169 = vbcast.lane.b32.xlu1 %v167_v53, 256 }
  0xaf   :  { %176 = vbcast.lane.b32.xlu0 %v174_v54, 256 }
  0xb1   :  { %396 = vbcast.lane.b32.xlu1 %v394_v55, 256 }
  0xb3   :  { %403 = vbcast.lane.b32.xlu0 %v401_v56, 256 }
  0xee   :  { %v432_v57 = vpop.permute.xlu0 %431 }
  0xef   :  { %vm433_vm2 = vcmp.eq.s32.totalorder %v1867_v58, %v432_v57 }
  0xf0   :  { %v445_v59 = vpop.permute.xlu1 %444 }
  0xf1   :  { %vm446_vm1 = vcmp.eq.s32.totalorder %v1867_v58, %v445_v59 }
  0xf2   :  { %v438_v60 = vpop.permute.xlu0 %437 }
  0xf3   :  { %vm439_vm3 = vcmp.eq.s32.totalorder %v1867_v58, %v438_v60 }
  0xf4   :  { %vm440_vm4 = vmor %vm433_vm2, %vm439_vm3  ;;  %v193_v61 = vpop.permute.xlu1 %192 }
  0xf5   :  { %vm447_vm5 = vmor %vm440_vm4, %vm446_vm1  ;;  %v243_v15 = vadd.s32 3, %v193_v61 }
  0xf6   :  { %v1303_v62 = vsel %vm447_vm5, 1.0, %v1599_v20  ;;  %v200_v63 = vpop.permute.xlu0 %199 }
  0xf7   :  { %v450_v1 = vpack.c.bf16 %v1303_v62, %v1303_v62  ;;  %v244_v16 = vadd.s32 3, %v200_v63  ;;  %vm251_vm9 = vcmp.eq.s32.totalorder %v1867_v58, %v243_v15  ;;  %v2134_v15 = vmov 0 }
  0xf8   :  { %v207_v4 = vpop.permute.xlu1 %206 }
  0xf9   :  { %1370 = vmatmul.mubr.msk.bf16.vlgmr.msra.gmra.mrb[0].mxu1 %vm2118_vm6, %v450_v1  ;;  %vm252_vm12 = vcmp.eq.s32.totalorder %v1867_v58, %v244_v16  ;;  %v245_v24 = vadd.s32 3, %v207_v4 }
  0xfa   :  { %1374 = vmatpush3.bf16.msra.mxu1 %v1404_v0  ;;  %v214_v5 = vpop.permute.xlu0 %213  ;;  %1377 = vmatprep.mubr.msk.bf16.mxu1 %vm2117_vm0, %v1599_v20 }
  0xfb   :  { %1375 = vmatprep.subr.bf16.mxu1 %v1599_v20  ;;  %v246_v26 = vadd.s32 3, %v214_v5  ;;  %vm253_vm5 = vcmp.eq.s32.totalorder %v1867_v58, %v245_v24 }
  0xfc   :  { %v274_v7 = vpop.permute.xlu1 %273 }
  0xfd   :  { %v324_v17 = vadd.s32 13, %v274_v7 }
  0xfe   :  { %1376 = vmatpush3.bf16.msra.mxu1 %v1405_v6  ;;  %v281_v8 = vpop.permute.xlu0 %280 }
  0xff   :  { %v325_v21 = vadd.s32 13, %v281_v8  ;;  %vm332_vm10 = vcmp.eq.s32.totalorder %v1867_v58, %v324_v17  ;;  %v2132_v8 = vmov 0 }
 0x100   :  { %v128_v9 = vpop.permute.xlu1 %127 }
 0x101   :  { %1378 = vmatmul.mubr.msk.bf16.vlgmr.msra.gmra.mrb[4].mxu1 %vm2118_vm6, %v450_v1  ;;  %vm178_vm7 = vcmp.eq.s32.totalorder %v1867_v58, %v128_v9  ;;  %vm333_vm15 = vcmp.eq.s32.totalorder %v1867_v58, %v325_v21 }
 0x102   :  { %v135_v11 = vpop.permute.xlu0 %134  ;;  %vm259_vm11 = vmor %vm178_vm7, %vm251_vm9 }
 0x103   :  { %vm179_vm8 = vcmp.eq.s32.totalorder %v1867_v58, %v135_v11  ;;  %vm340_vm1 = vmor %vm259_vm11, %vm332_vm10  ;;  %vm254_vm10 = vcmp.eq.s32.totalorder %v1867_v58, %v246_v26 }
 0x104   :  { %v288_v14 = vpop.permute.xlu1 %287  ;;  %vm260_vm13 = vmor %vm179_vm8, %vm252_vm12 }
 0x105   :  { %vm1892_vm3 = vmor %vm260_vm13, %vm333_vm15  ;;  %v326_v29 = vadd.s32 13, %v288_v14 }
 0x106   :  { %v295_v18 = vpop.permute.xlu0 %294 }
 0x107   :  { %v327_v32 = vadd.s32 13, %v295_v18  ;;  %vm334_vm12 = vcmp.eq.s32.totalorder %v1867_v58, %v326_v29 }
 0x108   :  { %v355_v19 = vpop.permute.xlu1 %354 }
 0x109   :  { %v405_v22 = vadd.s32 23, %v355_v19 }
 0x10a   :  { %v362_v23 = vpop.permute.xlu0 %361 }
 0x10b   :  { %v406_v25 = vadd.s32 23, %v362_v23  ;;  %vm413_vm14 = vcmp.eq.s32.totalorder %v1867_v58, %v405_v22 }
 0x10c   :  { %v142_v27 = vpop.permute.xlu1 %141  ;;  %vm1899_vm8 = vmor %vm340_vm1, %vm413_vm14  ;;  %vm335_vm1 = vcmp.eq.s32.totalorder %v1867_v58, %v327_v32 }
 0x10d   :  { %vm180_vm2 = vcmp.eq.s32.totalorder %v1867_v58, %v142_v27  ;;  %vm414_vm4 = vcmp.eq.s32.totalorder %v1867_v58, %v406_v25  ;;  %v1304_v42 = vsel %vm1899_vm8, 1.0, %v1599_v20 }
 0x10e   :  { %v149_v30 = vpop.permute.xlu0 %148  ;;  %vm261_vm9 = vmor %vm180_vm2, %vm253_vm5 }
 0x10f   :  { %vm181_vm7 = vcmp.eq.s32.totalorder %v1867_v58, %v149_v30  ;;  %vm1907_vm13 = vmor %vm1892_vm3, %vm414_vm4 }
 0x110   :  { %v369_v33 = vpop.permute.xlu1 %368  ;;  %vm262_vm11 = vmor %vm181_vm7, %vm254_vm10  ;;  %v1305_v43 = vsel %vm1907_vm13, 1.0, %v1599_v20 }
 0x111   :  { %v407_v35 = vadd.s32 23, %v369_v33  ;;  %vm342_vm14 = vmor %vm261_vm9, %vm334_vm12  ;;  %v1334_v45 = vpack.c.bf16 %v1305_v43, %v1304_v42 }
 0x112   :  { %v376_v37 = vpop.permute.xlu0 %375  ;;  %vm343_vm3 = vmor %vm262_vm11, %vm335_vm1 }
 0x113   :  { %vm415_vm15 = vcmp.eq.s32.totalorder %v1867_v58, %v407_v35  ;;  %v408_v40 = vadd.s32 23, %v376_v37  ;;  %1357 = vmatprep.mubr.msk.bf16.mxu0 %vm2118_vm6, %v1334_v45 }
 0x114   :  { %vm1919_vm2 = vmor %vm342_vm14, %vm415_vm15  ;;  %v221_v46 = vpop.permute.xlu1 %220 }
 0x115   :  { %vm416_vm4 = vcmp.eq.s32.totalorder %v1867_v58, %v408_v40  ;;  %v1306_v49 = vsel %vm1919_vm2, 1.0, %v1599_v20  ;;  %v247_v59 = vadd.s32 3, %v221_v46  ;;  %v1601_v40 = vmov 1966171168  }
 0x116   :  { %vm1924_vm5 = vmor %vm343_vm3, %vm416_vm4  ;;  %v228_v48 = vpop.permute.xlu0 %227  ;;  %v665_v42 = vunpack.c.l.s4 %v1601_v40 }
 0x117   :  { %v2131_v47 = vsel %vm1924_vm5, 4294967295, %v2130_v47  ;;  %v1307_v50 = vsel %vm1924_vm5, 1.0, %v1599_v20  ;;  %v248_v62 = vadd.s32 3, %v228_v48  ;;  %vm255_vm9 = vcmp.eq.s32.totalorder %v1867_v58, %v247_v59  ;;  %v1312_v59 = vld [vmem:[#allocation10] ss:$0 sm:$0xff] }
 0x118   :  { %v1335_v51 = vpack.c.bf16 %v1307_v50, %v1306_v49  ;;  %v235_v52 = vpop.permute.xlu1 %234  ;;  %v666_v49 = vunpack.c.0.s8 %v665_v42  ;;  %v1323_v50 = vld [vmem:[#allocation11] ss:$0 sm:$0xff] }
 0x119   :  { %vm256_vm14 = vcmp.eq.s32.totalorder %v1867_v58, %v248_v62  ;;  %v249_v6 = vadd.s32 3, %v235_v52 }
 0x11a   :  { %v242_v53 = vpop.permute.xlu0 %241  ;;  %1358 = vmatmul.mubr.msk.bf16.vlgmr.msra.gmra.mrb[0].mxu0 %vm2118_vm6, %v1335_v51  ;;  %v669_v52 = vsub.s32 %v666_v49, %v1751_v2 }
 0x11b   :  { %v250_v11 = vadd.s32 3, %v242_v53 }
 0x11c   :  { %v302_v54 = vpop.permute.xlu1 %301 }
 0x11d   :  { %v328_v60 = vadd.s32 13, %v302_v54 }
 0x11e   :  { %v309_v55 = vpop.permute.xlu0 %308 }
 0x11f   :  { %vm336_vm11 = vcmp.eq.s32.totalorder %v1867_v58, %v328_v60  ;;  %v329_v0 = vadd.s32 13, %v309_v55 }
 0x120   :  { %v156_v56 = vpop.permute.xlu1 %155 }
 0x121   :  { %vm182_vm7 = vcmp.eq.s32.totalorder %v1867_v58, %v156_v56  ;;  %vm337_vm4 = vcmp.eq.s32.totalorder %v1867_v58, %v329_v0 }
 0x122   :  { %v163_v57 = vpop.permute.xlu0 %162  ;;  %vm263_vm12 = vmor %vm182_vm7, %vm255_vm9 }
 0x123   :  { %vm183_vm10 = vcmp.eq.s32.totalorder %v1867_v58, %v163_v57  ;;  %vm344_vm1 = vmor %vm263_vm12, %vm336_vm11  ;;  %vm257_vm11 = vcmp.eq.s32.totalorder %v1867_v58, %v249_v6 }
 0x124   :  { %v316_v61 = vpop.permute.xlu1 %315  ;;  %vm264_vm15 = vmor %vm183_vm10, %vm256_vm14 }
 0x125   :  { %vm345_vm7 = vmor %vm264_vm15, %vm337_vm4  ;;  %v330_v14 = vadd.s32 13, %v316_v61  ;;  %vm258_vm15 = vcmp.eq.s32.totalorder %v1867_v58, %v250_v11  ;;  %vm2136_vm4 = vcmask 261120  }
 0x126   :  { %v323_v63 = vpop.permute.xlu0 %322 }
 0x127   :  { %v331_v19 = vadd.s32 13, %v323_v63 }
 0x128   :  { %v383_v1 = vpop.permute.xlu1 %382 }
 0x129   :  { %v409_v4 = vadd.s32 23, %v383_v1 }
 0x12a   :  { %v390_v5 = vpop.permute.xlu0 %389 }
 0x12b   :  { %vm417_vm3 = vcmp.eq.s32.totalorder %v1867_v58, %v409_v4  ;;  %v410_v7 = vadd.s32 23, %v390_v5 }
 0x12c   :  { %vm1943_vm0 = vmor %vm344_vm1, %vm417_vm3  ;;  %v170_v9 = vpop.permute.xlu1 %169  ;;  %vm338_vm1 = vcmp.eq.s32.totalorder %v1867_v58, %v330_v14 }
 0x12d   :  { %v2133_v8 = vsel %vm1943_vm0, 4294967295, %v2132_v8  ;;  %vm418_vm9 = vcmp.eq.s32.totalorder %v1867_v58, %v410_v7  ;;  %vm184_vm6 = vcmp.eq.s32.totalorder %v1867_v58, %v170_v9  ;;  %v1308_v17 = vsel %vm1943_vm0, 1.0, %v1599_v20 }
 0x12e   :  { %vm1949_vm10 = vmor %vm345_vm7, %vm418_vm9  ;;  %v177_v16 = vpop.permute.xlu0 %176 }
 0x12f   :  { %v2135_v15 = vsel %vm1949_vm10, 4294967295, %v2134_v15  ;;  %v1309_v18 = vsel %vm1949_vm10, 1.0, %v1599_v20  ;;  %vm185_vm12 = vcmp.eq.s32.totalorder %v1867_v58, %v177_v16  ;;  %vm265_vm14 = vmor %vm184_vm6, %vm257_vm11  ;;  %vm339_vm10 = vcmp.eq.s32.totalorder %v1867_v58, %v331_v19 }
 0x130   :  { %v1336_v21 = vpack.c.bf16 %v1309_v18, %v1308_v17  ;;  %v397_v22 = vpop.permute.xlu1 %396  ;;  %vm266_vm3 = vmor %vm185_vm12, %vm258_vm15  ;;  %vm818_vm15 = vcmask 1042434  }
 0x131   :  { %v411_v23 = vadd.s32 23, %v397_v22  ;;  %vm346_vm7 = vmor %vm265_vm14, %vm338_vm1  ;;  %vm2142_vm14 = vmmov 0   ;;  %vm820_vm1 = vcmask 1043459  }
 0x132   :  { %v404_v24 = vpop.permute.xlu0 %403  ;;  %1361 = vmatprep.mubr.msk.bf16.mxu0 %vm2136_vm4, %v1336_v21  ;;  %vm347_vm6 = vmor %vm266_vm3, %vm339_vm10  ;;  %vm816_vm10 = vcmask 1041409   ;;  %vm822_vm3 = vcmask 1044484  }
 0x133   :  { %vm419_vm9 = vcmp.eq.s32.totalorder %v1867_v58, %v411_v23  ;;  %v412_v25 = vadd.s32 23, %v404_v24  ;;  %vm2141_vm12 = vmmov %vm2136_vm4  ;;  %vm824_vm4 = vcmask 1045509  }
 0x134   :  { %vm1966_vm0 = vmor %vm346_vm7, %vm419_vm9  ;;  %vm826_vm7 = vcmask 1046534   ;;  %vm828_vm9 = vcmask 1047559  }
 0x135   :  { %vm420_vm11 = vcmp.eq.s32.totalorder %v1867_v58, %v412_v25  ;;  %v1310_v28 = vsel %vm1966_vm0, 1.0, %v1599_v20 }
 0x136   :  { %vm1971_vm5 = vmor %vm347_vm6, %vm420_vm11  ;;  %vm831_vm6 = vcmask 64512  }
 0x137   :  { %v1311_v29 = vsel %vm1971_vm5, 1.0, %v1599_v20  ;;  %vm2143_vm11 = vmmov %vm2141_vm12 }
 0x138   :  { %v1337_v30 = vpack.c.bf16 %v1311_v29, %v1310_v28 }
 0x13a   :  { %1362 = vmatmul.mubr.msk.bf16.gmra.mrb[4].mxu0 %vm2141_vm12, %v1337_v30  ;;  %vm2144_vm12 = vmmov %vm2143_vm11 }
 0x13b   :  { %1385 = vmatprep.mubr.msk.bf16.mxu0 %vm2142_vm14, %v1599_v20  ;;  %vm2145_vm14 = vmmov %vm2143_vm11 }
 0x1cc   :  { %v656_v32 = vpop.f32.mrb[0].mxu1 }
 0x1cd   :  { %v1371_v33 = vpop.f32.mrb[1].mxu1  ;;  %v657_v51 = vadd.f32 %v1323_v50, %v656_v32 }
 0x1ce   :  { %v659_v35 = vpop.f32.mrb[2].mxu1 }
 0x1cf   :  { %v1372_v37 = vpop.f32.mrb[3].mxu1  ;;  %v670_v53 = vrot.slane %v657_v51, %v669_v52  ;;  %v663_v21 = vcombine.high %v657_v51, %v657_v51 }
 0x1d1   :  { %v678_v54 = vcombine.high %v670_v53, %v670_v53  ;;  %v686_v55 = vrot.slane %v670_v53, %v669_v52  ;;  %v677_v22 = vrot.slane %v663_v21, %v669_v52 }
 0x1d3   :  { %v700_v56 = vrot.slane %v678_v54, %v669_v52  ;;  %v708_v57 = vcombine.high %v686_v55, %v686_v55  ;;  %v715_v5 = vrot.slane %v686_v55, %v1754_v3  ;;  %v679_v23 = vcombine.high %v677_v22, %v677_v22 }
 0x1d4   :  { %v1984_v43 = vpop.f32.mrb[4].mxu1  ;;  %v693_v24 = vrot.slane %v677_v22, %v669_v52 }
 0x1d5   :  { %v1379_v45 = vpop.f32.mrb[5].mxu1  ;;  %v710_v60 = vcombine.high %v700_v56, %v700_v56  ;;  %v723_v0 = vrot.slane %v708_v57, %v1754_v3  ;;  %v719_v17 = vrot.slane %v700_v56, %v1754_v3  ;;  %v707_v25 = vrot.slane %v679_v23, %v669_v52 }
 0x1d6   :  { %v1194_v46 = vpop.f32.mrb[6].mxu1  ;;  %v709_v28 = vcombine.high %v693_v24, %v693_v24  ;;  %v731_v42 = vrot.slane %v693_v24, %v1754_v3  ;;  %v1997_v57 = vsub.s32 %v1867_v58, %v1751_v2 }
 0x1d7   :  { %v1380_v48 = vpop.f32.mrb[7].mxu1  ;;  %v727_v9 = vrot.slane %v710_v60, %v1754_v3  ;;  %v711_v29 = vcombine.high %v707_v25, %v707_v25  ;;  %v735_v52 = vrot.slane %v707_v25, %v1754_v3 }
 0x1d8   :  { %v739_v35 = vrot.slane %v709_v28, %v1754_v3 }
 0x1d9   :  { %v743_v49 = vrot.slane %v711_v29, %v1754_v3 }
 0x1ed   :  { %v1359_v61 = vpop.f32.mrb[0].mxu0 }
 0x1ee   :  { %v574_v62 = vadd.f32 %v1359_v61, %v1312_v59  ;;  %v565_v63 = vpop.f32.mrb[1].mxu0 }
 0x1ef   :  { %v566_v1 = vadd.f32 %v1312_v59, %v565_v63  ;;  %v1360_v4 = vpop.f32.mrb[2].mxu0 }
 0x1f0   :  { %v577_v6 = vadd.f32 %v1360_v4, %v1312_v59  ;;  %v568_v7 = vpop.f32.mrb[3].mxu0  ;;  %v754_v11 = vmul.f32 %v723_v0, %v574_v62 }
 0x1f1   :  { %v569_v14 = vadd.f32 %v1312_v59, %v568_v7  ;;  %v752_v16 = vmul.f32 %v715_v5, %v566_v1 }
 0x1f2   :  { %v755_v18 = vmul.f32 %v727_v9, %v577_v6 }
 0x1f3   :  { %760 = vadd.xlane.f32.xlu1 %v752_v16  ;;  %v753_v19 = vmul.f32 %v719_v17, %v569_v14 }
 0x1f5   :  { %762 = vadd.xlane.f32.xlu0 %v753_v19 }
 0x1f7   :  { %766 = vadd.xlane.f32.xlu1 %v755_v18 }
 0x1f9   :  { %764 = vadd.xlane.f32.xlu0 %v754_v11 }
 0x20d   :  { %v1363_v30 = vpop.f32.mrb[4].mxu0 }
 0x20e   :  { %v590_v32 = vadd.f32 %v1363_v30, %v1312_v59  ;;  %v581_v33 = vpop.f32.mrb[5].mxu0 }
 0x20f   :  { %v582_v37 = vadd.f32 %v1312_v59, %v581_v33  ;;  %v1364_v40 = vpop.f32.mrb[6].mxu0 }
 0x210   :  { %v593_v45 = vadd.f32 %v1364_v40, %v1312_v59  ;;  %v584_v46 = vpop.f32.mrb[7].mxu0  ;;  %v758_v48 = vmul.f32 %v739_v35, %v590_v32 }
 0x211   :  { %v585_v50 = vadd.f32 %v1312_v59, %v584_v46  ;;  %v756_v51 = vmul.f32 %v731_v42, %v582_v37 }
 0x212   :  { %v759_v53 = vmul.f32 %v743_v49, %v593_v45 }
 0x213   :  { %768 = vadd.xlane.f32.xlu0 %v756_v51  ;;  %v757_v54 = vmul.f32 %v735_v52, %v585_v50 }
 0x215   :  { %770 = vadd.xlane.f32.xlu1 %v757_v54 }
 0x217   :  { %772 = vadd.xlane.f32.xlu0 %v758_v48 }
 0x219   :  { %774 = vadd.xlane.f32.xlu1 %v759_v53 }
 0x280   :  { %v761_v56 = vpop.xlane.xlu1 %760 }
 0x281   :  { %v787_v62 = vrot.slane %v761_v56, %v1997_v57 }
 0x282   :  { %v763_v55 = vpop.xlane.xlu0 %762 }
 0x283   :  { %v791_v61 = vrot.slane %v763_v55, %v1997_v57 }
 0x284   :  { %v767_v63 = vpop.xlane.xlu1 %766 }
 0x285   :  { %v817_v0 = vsel %vm816_vm10, %v791_v61, %v787_v62  ;;  %v799_v4 = vrot.slane %v767_v63, %v1997_v57 }
 0x286   :  { %v765_v60 = vpop.xlane.xlu0 %764 }
 0x287   :  { %v795_v59 = vrot.slane %v765_v60, %v1997_v57 }
 0x289   :  { %v819_v1 = vsel %vm818_vm15, %v795_v59, %v817_v0 }
 0x28a   :  { %v821_v5 = vsel %vm820_vm1, %v799_v4, %v819_v1 }
 0x2a0   :  { %v769_v2 = vpop.xlane.xlu0 %768 }
 0x2a1   :  { %v803_v58 = vrot.slane %v769_v2, %v1997_v57 }
 0x2a2   :  { %v771_v6 = vpop.xlane.xlu1 %770 }
 0x2a3   :  { %v823_v7 = vsel %vm822_vm3, %v803_v58, %v821_v5  ;;  %v807_v9 = vrot.slane %v771_v6, %v1997_v57 }
 0x2a4   :  { %v773_v11 = vpop.xlane.xlu0 %772 }
 0x2a5   :  { %v811_v14 = vrot.slane %v773_v11, %v1997_v57  ;;  %v825_v16 = vsel %vm824_vm4, %v807_v9, %v823_v7 }
 0x2a6   :  { %v775_v17 = vpop.xlane.xlu1 %774 }
 0x2a7   :  { %v815_v18 = vrot.slane %v775_v17, %v1997_v57  ;;  %v827_v19 = vsel %vm826_vm7, %v811_v14, %v825_v16 }
 0x2a9   :  { %v829_v21 = vsel %vm828_vm9, %v815_v18, %v827_v19 }
 0x2aa   :  { %v832_v22 = vsel %vm831_vm6, %v829_v21, -inf }
 0x2ab   :  { %833 = vmax.xlane.f32.xlu0 %v832_v22 }
 0x338   :  { %v834_v23 = vpop.xlane.xlu0 %833 }
 0x339   :  { %v839_v24 = vrot.slane %v834_v23, %v1754_v3  ;;  %v843_v25 = vrot.slane %v834_v23, %v1768_v10  ;;  %v847_v28 = vrot.slane %v834_v23, %v1773_v12  ;;  %v855_v29 = vrot.slane %v834_v23, %v1819_v34 }
 0x33a   :  { %v851_v30 = vrot.slane %v834_v23, %v1776_v13  ;;  %v863_v37 = vrot.slane %v834_v23, %v1831_v39  ;;  %v859_v46 = vrot.slane %v834_v23, %v1823_v36  ;;  %v867_v52 = vrot.slane %v834_v23, %v1836_v41 }
 0x33b   :  { %v876_v32 = vsub.f32 %v761_v56, %v839_v24  ;;  %v877_v33 = vsub.f32 %v763_v55, %v843_v25  ;;  %v878_v35 = vsub.f32 %v765_v60, %v847_v28  ;;  %v880_v40 = vsub.f32 %v769_v2, %v855_v29 }
 0x33c   :  { %v879_v48 = vsub.f32 %v767_v63, %v851_v30  ;;  %v882_v50 = vsub.f32 %v773_v11, %v863_v37  ;;  %v881_v53 = vsub.f32 %v771_v6, %v859_v46  ;;  %v883_v56 = vsub.f32 %v775_v17, %v867_v52 }
 0x33d   :  { %v884_v42 = vmul.f32 1.442695, %v876_v32  ;;  %v886_v45 = vmul.f32 1.442695, %v877_v33  ;;  %v888_v49 = vmul.f32 1.442695, %v878_v35 }
 0x33e   :  { %v892_v51 = vmul.f32 1.442695, %v880_v40  ;;  %v890_v54 = vmul.f32 1.442695, %v879_v48  ;;  %v896_v55 = vmul.f32 1.442695, %v882_v50 }
 0x33f   :  { %1410 = vpow2.f32 %v884_v42  ;;  %v894_v60 = vmul.f32 1.442695, %v881_v53  ;;  %v898_v62 = vmul.f32 1.442695, %v883_v56 }
 0x340   :  { %1412 = vpow2.f32 %v886_v45 }
 0x341   :  { %1414 = vpow2.f32 %v888_v49 }
 0x342   :  { %1416 = vpow2.f32 %v892_v51 }
 0x343   :  { %1418 = vpow2.f32 %v890_v54 }
 0x344   :  { %1420 = vpow2.f32 %v896_v55 }
 0x345   :  { %1422 = vpow2.f32 %v894_v60 }
 0x346   :  { %1424 = vpow2.f32 %v898_v62 }
 0x349   :  { %v1411_v61 = vpop.eup %1410 }
 0x34a   :  { %v1413_v59 = vpop.eup %1412  ;;  %909 = vperm.xlu1 %1401, %v1411_v61  }
 0x34b   :  { %912 = vperm.xlu0 %1400, %v1413_v59   ;;  %v1415_v63 = vpop.eup %1414 }
 0x34c   :  { %v1417_v0 = vpop.eup %1416 }
 0x34d   :  { %v1419_v1 = vpop.eup %1418 }
 0x34e   :  { %915 = vperm.xlu1 %1401, %v1415_v63   ;;  %v1421_v4 = vpop.eup %1420 }
 0x34f   :  { %921 = vperm.xlu0 %1400, %v1417_v0   ;;  %v1423_v2 = vpop.eup %1422 }
 0x350   :  { %v1425_v58 = vpop.eup %1424 }
 0x352   :  { %918 = vperm.xlu1 %1401, %v1419_v1  }
 0x353   :  { %927 = vperm.xlu0 %1400, %v1421_v4  }
 0x356   :  { %924 = vperm.xlu1 %1401, %v1423_v2  }
 0x35a   :  { %930 = vperm.xlu1 %1401, %v1425_v58  }
 0x3c9   :  { %v910_v5 = vpop.permute.xlu1 %909 }
 0x3ca   :  { %v913_v6 = vpop.permute.xlu0 %912  ;;  %v935_v11 = vrot.slane %v910_v5, %v1997_v57 }
 0x3cb   :  { %v939_v9 = vrot.slane %v913_v6, %v1997_v57 }
 0x3cd   :  { %v916_v7 = vpop.permute.xlu1 %915  ;;  %v964_v18 = vsel %vm816_vm10, %v939_v9, %v935_v11 }
 0x3ce   :  { %v943_v14 = vrot.slane %v916_v7, %v1997_v57  ;;  %v922_v16 = vpop.permute.xlu0 %921 }
 0x3cf   :  { %v951_v23 = vrot.slane %v922_v16, %v1997_v57 }
 0x3d0   :  { %v965_v21 = vsel %vm818_vm15, %v943_v14, %v964_v18 }
 0x3d1   :  { %v919_v17 = vpop.permute.xlu1 %918 }
 0x3d2   :  { %v947_v19 = vrot.slane %v919_v17, %v1997_v57  ;;  %v928_v25 = vpop.permute.xlu0 %927 }
 0x3d3   :  { %v959_v32 = vrot.slane %v928_v25, %v1997_v57 }
 0x3d4   :  { %v966_v22 = vsel %vm820_vm1, %v947_v19, %v965_v21 }
 0x3d5   :  { %v925_v24 = vpop.permute.xlu1 %924  ;;  %v967_v29 = vsel %vm822_vm3, %v951_v23, %v966_v22 }
 0x3d6   :  { %v955_v28 = vrot.slane %v925_v24, %v1997_v57 }
 0x3d8   :  { %v968_v30 = vsel %vm824_vm4, %v955_v28, %v967_v29 }
 0x3d9   :  { %v931_v33 = vpop.permute.xlu1 %930  ;;  %v969_v37 = vsel %vm826_vm7, %v959_v32, %v968_v30 }
 0x3da   :  { %v963_v35 = vrot.slane %v931_v33, %v1997_v57 }
 0x3dc   :  { %v970_v40 = vsel %vm828_vm9, %v963_v35, %v969_v37 }
 0x3dd   :  { %v972_v42 = vsel %vm831_vm6, %v970_v40, 0.0  ;;  %vm2149_vm6 = vmmov %vm2143_vm11 }
 0x3de   :  { %973 = vadd.xlane.f32.xlu0 %v972_v42 }
 0x46b   :  { %v974_v45 = vpop.xlane.xlu0 %973 }
 0x46c   :  { %1426 = vrcp.f32 %v974_v45 }
 0x476   :  { %v1427_v46 = vpop.eup %1426 }
 0x477   :  { %v980_v48 = vrot.slane %v1427_v46, %v1754_v3  ;;  %v984_v50 = vrot.slane %v1427_v46, %v1768_v10  ;;  %v988_v52 = vrot.slane %v1427_v46, %v1773_v12  ;;  %v992_v53 = vrot.slane %v1427_v46, %v1776_v13  ;;  %v1408_v13 = vld [vmem:[%s2113_s11] sm:$0xff]  }
 0x478   :  { %v996_v55 = vrot.slane %v1427_v46, %v1819_v34  ;;  %v1000_v60 = vrot.slane %v1427_v46, %v1823_v36  ;;  %v1004_v10 = vrot.slane %v1427_v46, %v1831_v39  ;;  %v1008_v12 = vrot.slane %v1427_v46, %v1836_v41  ;;  %1382 = vmatpush3.bf16.msra.mxu0 %v1408_v13  ;;  %v1409_v34 = vld [vmem:[%s2113_s11 + $0x8] sm:$0xff]  }
 0x479   :  { %v1017_v49 = vmul.f32 %v1411_v61, %v980_v48  ;;  %v1018_v51 = vmul.f32 %v1413_v59, %v984_v50  ;;  %v1019_v57 = vmul.f32 %v1415_v63, %v988_v52  ;;  %v1020_v54 = vmul.f32 %v1419_v1, %v992_v53  ;;  %1383 = vmatprep.subr.bf16.mxu0 %v1599_v20 }
 0x47a   :  { %v1021_v56 = vmul.f32 %v1417_v0, %v996_v55  ;;  %v1022_v3 = vmul.f32 %v1423_v2, %v1000_v60  ;;  %v1023_v61 = vmul.f32 %v1421_v4, %v1004_v10  ;;  %v1024_v59 = vmul.f32 %v1425_v58, %v1008_v12 }
 0x47b   :  { %1027 = vperm.xlu1 %1401, %v1017_v49  }
 0x47c   :  { %1384 = vmatpush3.bf16.msra.mxu0 %v1409_v34 }
 0x47f   :  { %1032 = vperm.xlu1 %1401, %v1018_v51  }
 0x483   :  { %1037 = vperm.xlu1 %1401, %v1019_v57  }
 0x487   :  { %1042 = vperm.xlu1 %1401, %v1020_v54  }
 0x48b   :  { %1047 = vperm.xlu1 %1401, %v1021_v56  }
 0x48f   :  { %1052 = vperm.xlu1 %1401, %v1022_v3  }
 0x493   :  { %1057 = vperm.xlu1 %1401, %v1023_v61  }
 0x497   :  { %1062 = vperm.xlu1 %1401, %v1024_v59  }
 0x4fa   :  { %v1028_v36 = vpop.permute.xlu1 %1027 }
 0x4fb   :  { %v1065_v39 = vsel %vm1899_vm8, %v1028_v36, 0.0  ;;  %vm2146_vm8 = vnez %v2131_v47 }
 0x4fc   :  { %v1073_v0 = vsel %vm2144_vm12, %v1065_v39, 0.0  ;;  %vm2151_vm12 = vmmov %vm2149_vm6 }
 0x4fd   :  { %v1074_v58 = vrot.slane %v1073_v0, 4 }
 0x4fe   :  { %v1033_v41 = vpop.permute.xlu1 %1032 }
 0x4ff   :  { %v1066_v62 = vsel %vm1907_vm13, %v1033_v41, 0.0  ;;  %v1075_v38 = vadd.f32 %v1074_v58, %v1073_v0  ;;  %vm2147_vm13 = vmmov %vm2143_vm11 }
 0x500   :  { %v1080_v63 = vsel %vm2143_vm11, %v1066_v62, 0.0  ;;  %vm2150_vm11 = vnez %v2135_v15 }
 0x501   :  { %v1081_v4 = vrot.slane %v1080_v63, 4  ;;  %v1076_v19 = vrot.slane %v1075_v38, 2 }
 0x502   :  { %v1038_v1 = vpop.permute.xlu1 %1037 }
 0x503   :  { %v1067_v2 = vsel %vm1919_vm2, %v1038_v1, 0.0  ;;  %v1082_v31 = vadd.f32 %v1081_v4, %v1080_v63  ;;  %vm2148_vm2 = vnez %v2133_v8  ;;  %v1077_v29 = vadd.f32 %v1076_v19, %v1075_v38 }
 0x504   :  { %v1087_v20 = vsel %vm2145_vm14, %v1067_v2, 0.0  ;;  %vm2152_vm14 = vmmov %vm2149_vm6 }
 0x505   :  { %v1088_v5 = vrot.slane %v1087_v20, 4  ;;  %v1083_v17 = vrot.slane %v1082_v31, 2  ;;  %v1078_v48 = vrot.slane %v1077_v29, 1 }
 0x506   :  { %v1043_v6 = vpop.permute.xlu1 %1042 }
 0x507   :  { %v1068_v7 = vsel %vm2146_vm8, %v1043_v6, 0.0  ;;  %v1089_v9 = vadd.f32 %v1088_v5, %v1087_v20  ;;  %v1084_v47 = vadd.f32 %v1083_v17, %v1082_v31  ;;  %v1079_v10 = vadd.f32 %v1078_v48, %v1077_v29  ;;  %vm2153_vm8 = vmmov %vm2149_vm6 }
 0x508   :  { %v1094_v11 = vsel %vm2147_vm13, %v1068_v7, 0.0 }
 0x509   :  { %v1095_v14 = vrot.slane %v1094_v11, 4  ;;  %v1090_v44 = vrot.slane %v1089_v9, 2  ;;  %v1085_v8 = vrot.slane %v1084_v47, 1  ;;  %v1129_v1 = vpack.c.bf16 %v1079_v10, %v1079_v10 }
 0x50a   :  { %v1048_v16 = vpop.permute.xlu1 %1047 }
 0x50b   :  { %v1096_v18 = vadd.f32 %v1095_v14, %v1094_v11  ;;  %v1069_v21 = vsel %vm2148_vm2, %v1048_v16, 0.0  ;;  %v1091_v30 = vadd.f32 %v1090_v44, %v1089_v9  ;;  %v1086_v55 = vadd.f32 %v1085_v8, %v1084_v47 }
 0x50c   :  { %v1101_v23 = vsel %vm2149_vm6, %v1069_v21, 0.0  ;;  %v1205_v38 = vunpack.c.l.b16 %v1129_v1 }
 0x50d   :  { %v1097_v22 = vrot.slane %v1096_v18, 2  ;;  %v1102_v24 = vrot.slane %v1101_v23, 4  ;;  %v1092_v49 = vrot.slane %v1091_v30, 1  ;;  %v1130_v39 = vpack.c.bf16 %v1086_v55, %v1086_v55 }
 0x50e   :  { %v1053_v25 = vpop.permute.xlu1 %1052 }
 0x50f   :  { %v1070_v28 = vsel %vm2150_vm11, %v1053_v25, 0.0  ;;  %v1103_v32 = vadd.f32 %v1102_v24, %v1101_v23  ;;  %v1098_v35 = vadd.f32 %v1097_v22, %v1096_v18  ;;  %v1093_v61 = vadd.f32 %v1092_v49, %v1091_v30 }
 0x510   :  { %v1108_v33 = vsel %vm2151_vm12, %v1070_v28, 0.0  ;;  %v1206_v20 = vunpack.c.l.b16 %v1130_v39 }
 0x511   :  { %v1109_v37 = vrot.slane %v1108_v33, 4  ;;  %v1104_v40 = vrot.slane %v1103_v32, 2  ;;  %v1099_v51 = vrot.slane %v1098_v35, 1  ;;  %v1131_v0 = vpack.c.bf16 %v1093_v61, %v1093_v61 }
 0x512   :  { %v1058_v42 = vpop.permute.xlu1 %1057  ;;  %v1213_v17 = vsel %vm816_vm10, %v1206_v20, %v1205_v38 }
 0x513   :  { %v1110_v45 = vadd.f32 %v1109_v37, %v1108_v33  ;;  %v1071_v46 = vsel %vm1966_vm0, %v1058_v42, 0.0  ;;  %v1105_v50 = vadd.f32 %v1104_v40, %v1103_v32  ;;  %v1100_v12 = vadd.f32 %v1099_v51, %v1098_v35  ;;  %vm2154_vm0 = vmmov %vm2149_vm6  ;;  %v1333_v33 = vld [vmem:[%s2115_s13] ss:$0 sm:$0xff] }
 0x514   :  { %v1115_v15 = vsel %vm2152_vm14, %v1071_v46, 0.0  ;;  %v1207_v7 = vunpack.c.l.b16 %v1131_v0 }
 0x515   :  { %v1111_v52 = vrot.slane %v1110_v45, 2  ;;  %v1116_v57 = vrot.slane %v1115_v15, 4  ;;  %v1106_v53 = vrot.slane %v1105_v50, 1  ;;  %v1132_v4 = vpack.c.bf16 %v1100_v12, %v1100_v12 }
 0x516   :  { %v1063_v54 = vpop.permute.xlu1 %1062  ;;  %v1214_v44 = vsel %vm818_vm15, %v1207_v7, %v1213_v17 }
 0x517   :  { %v1112_v56 = vadd.f32 %v1111_v52, %v1110_v45  ;;  %v1117_v60 = vadd.f32 %v1116_v57, %v1115_v15  ;;  %v1072_v3 = vsel %vm1971_vm5, %v1063_v54, 0.0  ;;  %v1107_v36 = vadd.f32 %v1106_v53, %v1105_v50 }
 0x518   :  { %v1122_v26 = vsel %vm2153_vm8, %v1072_v3, 0.0  ;;  %v1208_v9 = vunpack.c.l.b16 %v1132_v4 }
 0x519   :  { %v1113_v59 = vrot.slane %v1112_v56, 1  ;;  %v1118_v13 = vrot.slane %v1117_v60, 2  ;;  %v1123_v34 = vrot.slane %v1122_v26, 4  ;;  %v1133_v27 = vpack.c.bf16 %v1107_v36, %v1107_v36 }
 0x51a   :  { %v1215_v22 = vsel %vm820_vm1, %v1208_v9, %v1214_v44 }
 0x51b   :  { %v1114_v41 = vadd.f32 %v1113_v59, %v1112_v56  ;;  %v1119_v62 = vadd.f32 %v1118_v13, %v1117_v60  ;;  %v1124_v63 = vadd.f32 %v1123_v34, %v1122_v26  ;;  %v1209_v16 = vunpack.c.l.b16 %v1133_v27 }
 0x51d   :  { %v1120_v2 = vrot.slane %v1119_v62, 1  ;;  %v1125_v58 = vrot.slane %v1124_v63, 2  ;;  %v1134_v5 = vpack.c.bf16 %v1114_v41, %v1114_v41  ;;  %v1216_v24 = vsel %vm822_vm3, %v1209_v16, %v1215_v22 }
 0x51f   :  { %v1121_v6 = vadd.f32 %v1120_v2, %v1119_v62  ;;  %v1126_v31 = vadd.f32 %v1125_v58, %v1124_v63  ;;  %v1210_v18 = vunpack.c.l.b16 %v1134_v5 }
 0x521   :  { %v1135_v11 = vpack.c.bf16 %v1121_v6, %v1121_v6  ;;  %v1127_v14 = vrot.slane %v1126_v31, 1  ;;  %v1217_v25 = vsel %vm824_vm4, %v1210_v18, %v1216_v24 }
 0x523   :  { %v1128_v19 = vadd.f32 %v1127_v14, %v1126_v31  ;;  %v1211_v21 = vunpack.c.l.b16 %v1135_v11 }
 0x525   :  { %v1136_v23 = vpack.c.bf16 %v1128_v19, %v1128_v19  ;;  %v1218_v28 = vsel %vm826_vm7, %v1211_v21, %v1217_v25 }
 0x527   :  { %v1212_v47 = vunpack.c.l.b16 %v1136_v23 }
 0x529   :  { %v1219_v29 = vsel %vm828_vm9, %v1212_v47, %v1218_v28 }
 0x52a   :  { %v1220_v30 = vpack.c.b16 %v1219_v29, %v1219_v29 }
 0x52c   :  { %1386 = vmatmul.mubr.msk.bf16.vlgmr.msra.gmra.mrb[8].mxu0 %vm2154_vm0, %v1220_v30 }
 0x5ff   :  { %v1270_v32 = vpop.f32.mrb[8].mxu0 }
 0x600   :  { %v1271_v35 = vadd.f32 %v1270_v32, %v1984_v43  ;;  %v1387_v37 = vpop.f32.mrb[9].mxu0 }
 0x601   :  { %v1273_v40 = vpop.f32.mrb[10].mxu0 }
 0x602   :  { %v1283_v42 = vadd.f32 %v1333_v33, %v1271_v35  ;;  %v1388_v8 = vpop.f32.mrb[11].mxu0 }
 0x604   :  { %1284 = vst [vmem:[#allocation13] sm:$0xff] %v1283_v42 }
 0x605   :  { %1571 = shalt.err (!%p1568_p10)
}
 0x606   :  { %s1572_s13 = scalar_lea.hbm %s2116_s14, 128 }
 0x607   :  { %p1573_p11 = scmp.ne.s32.totalorder %s2116_s14, %s1572_s13  ;;  %p1576_p12 = scmp.lt.u32.totalorder %s1572_s13, %s2116_s14 }
 0x609   :  { %p1578_p13 = pnand %p1576_p12, %p1573_p11 }
 0x60b   :  { %1581 = shalt.err (!%p1578_p13)
}
 0x60c   :  { %1294 = dma.vmem_to_hbm [thread:$0]  %s1292_s17, 128, %s2116_s14, [#allocation4]  }
 0x60d   :  { %1590 = dma.done.wait [#allocation4], 128  }
 0x60e   :  { %1591 = vsyncadd [#allocation4], 4294967168 }
 0x60f   :  { %1298 = vsyncpa [#allocation3], 1 }
 0x610   :  { %1299 = vsyncpa [#allocation6], 1 }
 0x611   :  { %1300 = vsyncpa [#allocation9], 1 }
 0x612   :  { %1301 = vsyncpa [#allocation12], 1 }
 0x613   :  { %1302 = vsyncpa [#allocation4], 1 }

</bundles_post_ra>
